<compile_context>
chip_gen: v5e
topology: v5e:2x2
jax: 0.10.0
libtpu: 0.0.40
codegen_flags: <defaults>
</compile_context>

<pallas_src>
import functools

import jax
import jax.numpy as jnp
import numpy as np
from jax.experimental import pallas as pl
from jax.experimental.pallas import tpu as pltpu


# ---------------------------------------------------------------------------
# Kernels
# ---------------------------------------------------------------------------

def _repeat_matmul_kernel(x_ref, r_ref, o_ref, *, n_stores, store_w, triple):
    """(TILE_R, K) x (K, store_w) -> n_stores contiguous stores of width store_w.

    r_ref is a constant 0/1 bf16 repeat matrix: every output element has exactly
    one nonzero product, so the matmul is an exact copy.
    NOTE: the 0-products smear inf/nan across a packed output row (0*inf = nan);
    fine for ordinary activations, a deviation from a pure copy otherwise.
    """
    r = r_ref[...]                                    # bf16 0/1 repeat matrix
    if triple:
        # Exact f32 copy through the MXU in 3 single-pass bf16 matmuls:
        # x = hi + mid + lo with disjoint 8-bit mantissa windows; summing the
        # three copied chunks in f32 reconstructs x bit-exactly (normal f32).
        x = x_ref[...].astype(jnp.float32)
        hi = x.astype(jnp.bfloat16)
        r1 = x - hi.astype(jnp.float32)
        mid = r1.astype(jnp.bfloat16)
        lo = (r1 - mid.astype(jnp.float32)).astype(jnp.bfloat16)
        xw = jnp.dot(hi, r, preferred_element_type=jnp.float32)
        xw = xw + jnp.dot(mid, r, preferred_element_type=jnp.float32)
        xw = xw + jnp.dot(lo, r, preferred_element_type=jnp.float32)
    else:
        # bf16 / int8 / uint8 inputs are exact in a single bf16 MXU pass.
        x = x_ref[...].astype(jnp.bfloat16)
        xw = jnp.dot(x, r, preferred_element_type=jnp.float32)
    xw = xw.astype(o_ref.dtype)
    # H-repeat (when not folded into the matrix) = lane-aligned contiguous
    # stores: store_w is a multiple of 128 whenever n_stores > 1 was chosen.
    for i in range(n_stores):
        o_ref[:, i * store_w:(i + 1) * store_w] = xw


def _repeat_copy_kernel(x_ref, o_ref, *, n_stores, store_w):
    """sw == 1 fast path: pure H-repeat, no MXU, just contiguous stores."""
    x = x_ref[...]
    for i in range(n_stores):
        o_ref[:, i * store_w:(i + 1) * store_w] = x


# ---------------------------------------------------------------------------
# Host-side helpers
# ---------------------------------------------------------------------------

def _pick_row_group(rows, W, row_out):
    """Group g source rows along the lane axis (g divides rows, g*W <= 128) so
    the per-block output width is 128-aligned (preferred) or at least >= 128."""
    best = 1
    for g in range(1, 17):
        if rows % g or g * W > 128:
            continue
        if (g * row_out) % 128 == 0:
            return g
        if best == 1 and row_out < 128 and g * row_out >= 128:
            best = g
    return best


def _build_repeat_matrix(W, sw, sh_fold, g):
    """0/1 bf16 matrix of shape (g*W, g*sh_fold*W*sw) performing the W-repeat
    (and, if sh_fold > 1, the H-repeat) for g row-major-packed source rows."""
    w_rep = W * sw
    opr = sh_fold * w_rep                        # output elems per source row
    k = np.arange(g * W)[:, None]                # k = p*W + w
    l = np.arange(g * opr)[None, :]              # l = p*opr + i*w_rep + w*sw + j
    mat = ((l // opr) == (k // W)) & (((l % w_rep) // sw) == (k % W))
    return jnp.asarray(mat, dtype=jnp.bfloat16)


_SINGLE_PASS_DTYPES = (jnp.dtype(jnp.bfloat16), jnp.dtype(jnp.int8),
                       jnp.dtype(jnp.uint8))


def interpolate_nearest(x, scale_h=2, scale_w=None):
    """Equivalent of F.interpolate(x, scale_factor=(sh, sw), mode='nearest')."""
    assert x.ndim == 4, "expected NCHW input"
    sh = int(scale_h)
    sw = int(scale_w) if scale_w is not None else sh
    assert sh >= 1 and sw >= 1
    N, C, H, W = x.shape
    if sh == 1 and sw == 1:
        return x

    Ho, Wo = H * sh, W * sw
    rows = N * C * H                  # one row per source (n, c, h)
    w_rep = W * sw
    row_out = sh * w_rep              # output elems per source row
    itemsize = jnp.dtype(x.dtype).itemsize
    sub = {4: 8, 2: 16, 1: 32}.get(itemsize, 8)   # sublane packing per dtype

    # --- layout decisions ---------------------------------------------------
    use_matmul = sw > 1
    triple = use_matmul and jnp.dtype(x.dtype) not in _SINGLE_PASS_DTYPES
    if use_matmul:
        # Lane alignment: if w_rep % 128 == 0, keep W-only matmul + sh aligned
        # stores (cheapest on the MXU).  Otherwise fold the H-repeat (and g
        # packed rows) into the matrix -> one lane-dense full-block store.
        fold_h = (w_rep % 128) != 0
        if fold_h and triple and sh > 2 and w_rep >= 128:
            fold_h = False            # folding would make the MXU the bottleneck
        g = _pick_row_group(rows, W, row_out) if fold_h else 1
        sh_fold = sh if fold_h else 1
        n_stores = 1 if fold_h else sh
        in_w = g * W
        store_w = g * sh_fold * w_rep
        rep = _build_repeat_matrix(W, sw, sh_fold, g)
        # TODO(synk): for very large W (repeat matrix >~ 8 MiB) chunk the W axis
        # with an extra grid dimension instead of a fully resident matrix.
    else:
        # sw == 1: pure H-repeat, no MXU at all.
        g, n_stores, in_w, store_w = 1, sh, W, W
        rep = None

    slab_rows = rows // g
    out_w = n_stores * store_w        # == g * row_out
    x2d = x.reshape(slab_rows, in_w)  # free reshape (contiguous)

    # --- tile sizing (generation aware) --------------------------------------
    try:
        kind = jax.devices()[0].device_kind.lower()
    except Exception:  # pragma: no cover
        kind = ""
    big_vmem = any(t in kind for t in ("v4", "v5", "v6"))   # 128 MiB VMEM chips
    target_out_tile = (12 if big_vmem else 6) * 1024 * 1024
    vmem_limit = (80 if big_vmem else 48) * 1024 * 1024
    if "v2" in kind or "v3" in kind:                        # 16 MiB VMEM chips
        target_out_tile, vmem_limit = 2 * 1024 * 1024, 12 * 1024 * 1024

    rep_bytes = 2 * rep.size * 2 if rep is not None else 0  # double-buffered bf16
    budget = max(target_out_tile - rep_bytes, 1 << 20)
    out_row_bytes = max(out_w * itemsize, 1)
    tile_r = max(sub, (budget // out_row_bytes) // sub * sub)
    # Keep >= ~4 grid steps when possible (pipeline overlap; v7x dual TC).
    quarter = -(-slab_rows // 4)
    quarter = max(sub, -(-quarter // sub) * sub)
    tile_r = min(tile_r, quarter)
    if tile_r >= slab_rows:
        tile_r = slab_rows            # single block == full dim, always legal
    num_tiles = pl.cdiv(slab_rows, tile_r)

    # --- pallas_call ----------------------------------------------------------
    out_shape = jax.ShapeDtypeStruct((slab_rows, out_w), x.dtype)
    x_spec = pl.BlockSpec((tile_r, in_w), lambda i: (i, 0))
    out_spec = pl.BlockSpec((tile_r, out_w), lambda i: (i, 0))
    compiler_params = pltpu.CompilerParams(
        dimension_semantics=("parallel",),       # shard row tiles across TCs
        vmem_limit_bytes=vmem_limit,
    )
    out_bytes = rows * row_out * itemsize

    if use_matmul:
        kernel = functools.partial(_repeat_matmul_kernel, n_stores=n_stores,
                                   store_w=store_w, triple=triple)
        passes = 3 if triple else 1
        cost = pl.CostEstimate(
            flops=2 * slab_rows * in_w * store_w * passes,
            transcendentals=0,
            bytes_accessed=x2d.size * itemsize + out_bytes + rep.size * 2)
        grid_spec = pltpu.PrefetchScalarGridSpec(
            num_scalar_prefetch=0, grid=(num_tiles,),
            in_specs=[x_spec,
                      pl.BlockSpec((in_w, store_w), lambda i: (0, 0))],  # resident
            out_specs=out_spec)
        out2d = pl.pallas_call(kernel, out_shape=out_shape, grid_spec=grid_spec,
                               compiler_params=compiler_params,
                               cost_estimate=cost)(x2d, rep)
    else:
        kernel = functools.partial(_repeat_copy_kernel, n_stores=n_stores,
                                   store_w=store_w)
        cost = pl.CostEstimate(flops=0, transcendentals=0,
                               bytes_accessed=x2d.size * itemsize + out_bytes)
        grid_spec = pltpu.PrefetchScalarGridSpec(
            num_scalar_prefetch=0, grid=(num_tiles,),
            in_specs=[x_spec], out_specs=out_spec)
        out2d = pl.pallas_call(kernel, out_shape=out_shape, grid_spec=grid_spec,
                               compiler_params=compiler_params,
                               cost_estimate=cost)(x2d)

    # (slab_rows, g*sh*W*sw) is already the contiguous layout of
    # (N, C, H*sh, W*sw): free reshape, no transpose.
    return out2d.reshape(N, C, Ho, Wo)


class Interpolate:
    """JAX/Pallas mirror of the PyTorch Interpolate module (nearest mode only)."""

    def __init__(self, size=None, scale_factor=None, mode="nearest", align_corners=None):
        assert mode == "nearest", "only mode='nearest' is implemented"
        # TODO(synk): 'linear'/'bilinear'/'bicubic' modes, align_corners, and
        # 3-D/5-D inputs are not implemented.
        self.size = size
        self.scale_factor = scale_factor

    def __call__(self, x):
        assert x.ndim == 4, "expected NCHW input"
        _, _, H, W = x.shape
        if self.scale_factor is not None:
            sf = self.scale_factor
            if isinstance(sf, (tuple, list)):
                sh_f, sw_f = float(sf[0]), float(sf[1])
            else:
                sh_f = sw_f = float(sf)
            sh, sw = int(sh_f), int(sw_f)
            assert sh == sh_f and sw == sw_f, "only integer scale factors are supported"
        else:
            assert self.size is not None, "need size or scale_factor"
            size = self.size
            if isinstance(size, int):
                size = (size, size)
            sh, sw = int(size[0]) // H, int(size[1]) // W
            assert sh * H == size[0] and sw * W == size[1], \
                "size must be an integer multiple of the input spatial shape"
        return interpolate_nearest(x, scale_h=sh, scale_w=sw)


if __name__ == "__main__":
    key = jax.random.PRNGKey(0)
    k1, k2, k3, k4, k5 = jax.random.split(key, 5)

    def ref_nearest(a, sh, sw):
        return np.repeat(np.repeat(np.asarray(a), sh, axis=2), sw, axis=3)

    # 1) main config: small feature map, scale 2 (H-fold + row-group, lane-dense)
    x1 = jax.random.normal(k1, (2, 4, 16, 16), dtype=jnp.float32)
    y1 = jax.block_until_ready(Interpolate(scale_factor=2, mode="nearest")(x1))
    assert y1.shape == (2, 4, 32, 32), y1.shape
    np.testing.assert_array_equal(np.asarray(y1), ref_nearest(x1, 2, 2))

    # 2) size= branch, same tensor
    y1b = jax.block_until_ready(Interpolate(size=(32, 32), mode="nearest")(x1))
    np.testing.assert_array_equal(np.asarray(y1b), ref_nearest(x1, 2, 2))

    # 3) 128-aligned W-repeat path + ragged row tiles (50 rows, tile 16)
    x2 = jax.random.normal(k2, (1, 1, 50, 64), dtype=jnp.float32)
    y2 = jax.block_until_ready(Interpolate(scale_factor=2, mode="nearest")(x2))
    np.testing.assert_array_equal(np.asarray(y2), ref_nearest(x2, 2, 2))

    # 4) odd spatial dims, anisotropic scale (fold + row grouping, misaligned W)
    x3 = jax.random.normal(k3, (1, 3, 5, 7), dtype=jnp.float32)
    y3 = jax.block_until_ready(Interpolate(scale_factor=(2, 3), mode="nearest")(x3))
    np.testing.assert_array_equal(np.asarray(y3), ref_nearest(x3, 2, 3))

    # 5) bf16 single-pass MXU path
    x4 = jax.random.normal(k4, (1, 2, 16, 16), dtype=jnp.bfloat16)
    y4 = jax.block_until_ready(Interpolate(scale_factor=2, mode="nearest")(x4))
    np.testing.assert_array_equal(np.asarray(y4.astype(jnp.float32)),
                                  ref_nearest(x4.astype(jnp.float32), 2, 2))

    # 6) sw == 1: pure-copy H-repeat path (no MXU)
    x5 = jax.random.normal(k5, (1, 2, 16, 128), dtype=jnp.float32)
    y5 = jax.block_until_ready(Interpolate(scale_factor=(2, 1), mode="nearest")(x5))
    np.testing.assert_array_equal(np.asarray(y5), ref_nearest(x5, 2, 1))

    print("KERNEL_OK")
</pallas_src>

<mosaic_0001>
module attributes {stable_mosaic.version = 11 : i64} {
  func.func @_repeat_matmul_kernel(%arg0: i32, %arg1: memref<16x32xf32, #tpu.memory_space<vmem>>, %arg2: memref<32x128xbf16, #tpu.memory_space<vmem>>, %arg3: memref<16x128xf32, #tpu.memory_space<vmem>>) attributes {dimension_semantics = [#tpu.dimension_semantics<parallel>], iteration_bounds = array<i64: 4>, scalar_prefetch = 0 : i64, scratch_operands = 0 : i64, tpu.core_type = #tpu.core_type<tc>, window_params = [{transform_indices = @transform_0, window_bounds = array<i64: 16, 32>}, {pipeline_mode = #tpu.pipeline_mode<synchronous>, transform_indices = @transform_1, window_bounds = array<i64: 32, 128>}, {transform_indices = @transform_2, window_bounds = array<i64: 16, 128>}]} {
    %c0 = arith.constant 0 : index
    %c0_0 = arith.constant 0 : index
    %0 = vector.load %arg2[%c0, %c0_0] : memref<32x128xbf16, #tpu.memory_space<vmem>>, vector<32x128xbf16>
    %c0_1 = arith.constant 0 : index
    %c0_2 = arith.constant 0 : index
    %1 = vector.load %arg1[%c0_1, %c0_2] : memref<16x32xf32, #tpu.memory_space<vmem>>, vector<16x32xf32>
    %2 = arith.truncf %1 : vector<16x32xf32> to vector<16x32xbf16>
    %3 = arith.extf %2 : vector<16x32xbf16> to vector<16x32xf32>
    %4 = arith.subf %1, %3 : vector<16x32xf32>
    %5 = arith.truncf %4 : vector<16x32xf32> to vector<16x32xbf16>
    %6 = arith.extf %5 : vector<16x32xbf16> to vector<16x32xf32>
    %7 = arith.subf %4, %6 : vector<16x32xf32>
    %8 = arith.truncf %7 : vector<16x32xf32> to vector<16x32xbf16>
    %cst = arith.constant dense<0.000000e+00> : vector<16x128xf32>
    %9 = tpu.matmul %2, %0, %cst {dimension_numbers = #tpu.dot_dimension_numbers<[1], [0], [0], [1], [0, 0, 1, 1], [], []>} : vector<16x32xbf16>, vector<32x128xbf16>, vector<16x128xf32> -> vector<16x128xf32>
    %cst_3 = arith.constant dense<0.000000e+00> : vector<16x128xf32>
    %10 = tpu.matmul %5, %0, %cst_3 {dimension_numbers = #tpu.dot_dimension_numbers<[1], [0], [0], [1], [0, 0, 1, 1], [], []>} : vector<16x32xbf16>, vector<32x128xbf16>, vector<16x128xf32> -> vector<16x128xf32>
    %11 = arith.addf %9, %10 : vector<16x128xf32>
    %cst_4 = arith.constant dense<0.000000e+00> : vector<16x128xf32>
    %12 = tpu.matmul %8, %0, %cst_4 {dimension_numbers = #tpu.dot_dimension_numbers<[1], [0], [0], [1], [0, 0, 1, 1], [], []>} : vector<16x32xbf16>, vector<32x128xbf16>, vector<16x128xf32> -> vector<16x128xf32>
    %13 = arith.addf %11, %12 : vector<16x128xf32>
    %c0_5 = arith.constant 0 : index
    %c0_6 = arith.constant 0 : index
    %14 = vector.load %arg3[%c0_5, %c0_6] : memref<16x128xf32, #tpu.memory_space<vmem>>, vector<16x128xf32>
    tpu.vector_store %arg3[%c0_5, %c0_6], %13 {strides = array<i32>} : memref<16x128xf32, #tpu.memory_space<vmem>>, vector<16x128xf32>,
    return
  }
  func.func @transform_0(%arg0: i32) -> (i32, i32) {
    %c0_i32 = arith.constant 0 : i32
    %c0_i32_0 = arith.constant 0 : i32
    return %arg0, %c0_i32 : i32, i32
  }
  func.func @transform_1(%arg0: i32) -> (i32, i32) {
    %c0_i32 = arith.constant 0 : i32
    %c0_i32_0 = arith.constant 0 : i32
    %c0_i32_1 = arith.constant 0 : i32
    return %c0_i32, %c0_i32_0 : i32, i32
  }
  func.func @transform_2(%arg0: i32) -> (i32, i32) {
    %c0_i32 = arith.constant 0 : i32
    %c0_i32_0 = arith.constant 0 : i32
    return %arg0, %c0_i32 : i32, i32
  }
}

</mosaic_0001>

<bundles_post_ra>
// kernel: tpu_custom_call.1
= control target key start
LH: loop header
LB: loop body
LE: loop exit
PB: predicated region body
PF: predicated region fallthrough
CT: control target
= control target key end

     0   :  { %7 = vsyncpa [#allocation3], 0  ;;  %s562_s0 = inlined_call_operand.vmem [shape: f32[64,32], index: 0, kind: input, shape index: {}]   ;;  %s563_s1 = inlined_call_operand.vmem [shape: bf16[32,128], index: 1, kind: input, shape index: {}]   ;;  %s564_s2 = inlined_call_operand.hbm [shape: f32[64,128], index: 2, kind: output, shape index: {}]  }
   0x1   :  { %9 = vsyncpa [#allocation3 + $0x1], 0  ;;  %s469_s9 = smov 0   ;;  %s471_s10 = smov 0  }
   0x2   :  { %s473_s11 = smov 0   ;;  %s475_s12 = smov 0  }
   0x3 LB: > { %s490_s13 = sadd.s32 4294967295, %s450_s12   ;;  %s321_s14 = sadd.s32 4294967294, %s450_s12   ;;  %s450_s12 = sphi %s475_s12, %s570_s12   ;;  %s446_s11 = sphi %s473_s11, %s569_s11   ;;  %s442_s10 = sphi %s471_s10, %s568_s10   ;;  %s438_s9 = sphi %s469_s9, %s567_s9  }
   0x4   : > { %s494_s15 = sadd.s32 1, %s450_s12   ;;  %s69_s16 = sadd.s32 1, %s446_s11 }
   0x5   : > { %s66_s17 = ssub.s32 %s450_s12, %s494_s15  ;;  %p79_p0 = scmp.ne.s32.totalorder %s446_s11, %s442_s10 }
   0x6   : > { %p67_p1 = scmp.eq.s32.totalorder %s66_s17, 0  ;;  %p80_p2 = scmp.eq.s32.totalorder %s490_s13, 3 }
   0x7   : > { %p85_p3 = scmp.ne.s32.totalorder %s442_s10, %s438_s9  ;;  %p86_p4 = scmp.eq.s32.totalorder %s321_s14, 3 }
   0x8   : > { %s505_s18 = scalar_select %p67_p1, %s446_s11, %s69_s16  }
   0x9   : > { %p507_p5 = por %p80_p2, %p79_p0  ;;  %p511_p6 = por %p86_p4, %p85_p3 }
   0xa   : > { %p324_p7 = scmp.ge.s32.totalorder %s450_s12, 1  ;;  %p116_p8 = scmp.lt.s32.totalorder %s450_s12, 5 }
   0xc   : > { %p117_p9 = pnand %p324_p7, %p116_p8 }
   0xd   : > { %s326_s23 = sshll.u32 (!%p117_p9), %s490_s13, 1  ;;  %s135_s30 = sand.u32 (!%p117_p9), 1, %s442_s10  }
   0xe   : > { %120 = sbr.rel (%p117_p9) target bundleno = 183 (0xb7), region = 28  ;;  %p139_p10 = scmp.lt.s32.totalorder (!%p117_p9), %s326_s23, 7 }
   0xf   : > { %s325_s3 = sshll.u32 (!%p117_p9), %s135_s30, 4  ;;  %s346_s4 = sshll.u32 (!%p117_p9), %s490_s13, 4 }
  0x10   : > { %s255_s7 = scalar_lea.hbm (!%p117_p9), %s564_s2, %s346_s4  ;;  %s137_s8 = scalar_lea.vmem (!%p117_p9), [#allocation2], %s325_s3 }
  0x11   : > { %s256_s14 = sshll.u32 (!%p117_p9), %s137_s8, 4  ;;  %s258_s16 = sshll.u32 (!%p117_p9), %s255_s7, 4  ;;  %s257_s14 = int_to_ptr.vmem [resolvable:$true] %s256_s14  ;;  %s259_s16 = int_to_ptr.hbm [resolvable:$true] %s258_s16 }
  0x12   : > { %s244_s13 = scalar_lea.sflag (!%p117_p9), [#allocation3], %s135_s30  ;;  %s402_s17 = sshra.s32 (!%p117_p9), %s259_s16, 4  ;;  %s403_s17 = int_to_ptr.hbm [resolvable:$true] %s402_s17 }
  0x13   : > { %v345_v0 = vld [vmem:[%s563_s1 + $0x8] sm:$0xff]  ;;  %v344_v1 = vld [vmem:[%s563_s1] sm:$0xff]  ;;  %s572_s23 = smov (!%p139_p10, %s326_s23), 7  ;;  %vm182_vm0 = vcmask 261120   ;;  %s404_s21 = scalar_lea.hbm %s403_s17, 16 }
  0x14   : > { %214 = vmatpush.bf16.msra.mxu1 %v345_v0  ;;  %192 = vmatpush.bf16.msra.mxu0 %v345_v0  ;;  %s327_s26 = sshll.u32 %s572_s23, 3  ;;  %p405_p11 = scmp.ne.s32.totalorder %s403_s17, %s404_s21 }
  0x15   : > { %231 = vmatpush.bf16.msra.mxu2 %v345_v0  ;;  %s142_s29 = scalar_lea.vmem %s562_s0, %s327_s26  ;;  %s408_s24 = scalar_lea.hbm %s564_s2, 64 }
  0x16   : > { %v150_v2 = vld [vmem:[%s142_s29] sm:$0xff]  ;;  %v151_v3 = vld [vmem:[%s142_s29 + $0x8] sm:$0xff]  ;;  %p406_p12 = pnand %p405_p11, %p507_p5  ;;  %p409_p0 = scmp.lt.s32.totalorder %s403_s17, %s564_s2 }
  0x17   : > { %v152_v4 = vpack.c.bf16 %v150_v2, %v150_v2  ;;  %v153_v5 = vpack.c.bf16 %v151_v3, %v151_v3  ;;  %p410_p1 = scmp.lt.s32.totalorder %s408_s24, %s404_s21 }
  0x18   : > { %215 = vmatpush.bf16.msra.mxu1 %v344_v1  ;;  %193 = vmatpush.bf16.msra.mxu0 %v344_v1  ;;  %p407_p13 = pneg %p406_p12 }
  0x19   : > { %232 = vmatpush.bf16.msra.mxu2 %v344_v1  ;;  %v154_v6 = vunpack.c.l.bf16 %v152_v4  ;;  %v155_v7 = vunpack.c.l.bf16 %v153_v5  ;;  %v202_v8 = vunpack.c.l.b16 %v152_v4  ;;  %v203_v9 = vunpack.c.l.b16 %v153_v5  ;;  %p411_p2 = por %p410_p1, %p409_p0 }
  0x1b   : > { %v204_v10 = vpack.c.b16 %v203_v9, %v202_v8  ;;  %v156_v11 = vsub.f32 %v150_v2, %v154_v6  ;;  %v157_v12 = vsub.f32 %v151_v3, %v155_v7  ;;  %p412_p3 = pnand %p411_p2, %p407_p13 }
  0x1d   : > { %337 = vmatmul.msk.bf16.vlgmr.msra.gmra.mxu1 %vm182_vm0, %v204_v10  ;;  %v158_v13 = vpack.c.bf16 %v156_v11, %v156_v11  ;;  %v159_v14 = vpack.c.bf16 %v157_v12, %v157_v12 }
  0x1f   : > { %v167_v15 = vunpack.c.l.b16 %v158_v13  ;;  %v168_v16 = vunpack.c.l.b16 %v159_v14  ;;  %v160_v17 = vunpack.c.l.bf16 %v158_v13  ;;  %v161_v18 = vunpack.c.l.bf16 %v159_v14 }
  0x21   : > { %v169_v19 = vpack.c.b16 %v168_v16, %v167_v15  ;;  %v162_v20 = vsub.f32 %v156_v11, %v160_v17  ;;  %v163_v21 = vsub.f32 %v157_v12, %v161_v18 }
  0x23   : > { %336 = vmatmul.msk.bf16.vlgmr.msra.gmra.mxu0 %vm182_vm0, %v169_v19  ;;  %v164_v22 = vpack.c.bf16 %v163_v21, %v162_v20 }
  0x25   : > { %338 = vmatmul.msk.bf16.vlgmr.msra.gmra.mxu2 %vm182_vm0, %v164_v22 }
  0x9a   : > { %v217_v24 = vpop.f32.mrf.mxu1 }
  0xa0   : > { %v195_v23 = vpop.f32.mrf.mxu0 }
  0xa1   : > { %v218_v25 = vadd.f32 %v217_v24, %v195_v23 }
  0xa2   : > { %v219_v29 = vpop.f32.mrf.mxu1 }
  0xa8   : > { %v234_v26 = vpop.f32.mrf.mxu2  ;;  %v197_v28 = vpop.f32.mrf.mxu0 }
  0xa9   : > { %v239_v27 = vadd.f32 %v234_v26, %v218_v25  ;;  %v220_v30 = vadd.f32 %v219_v29, %v197_v28 }
  0xab   : > { %241 = vst [vmem:[%s137_s8] sm:$0xff] %v239_v27 }
  0xb0   : > { %v236_v31 = vpop.f32.mrf.mxu2 }
  0xb1   : > { %v240_v32 = vadd.f32 %v236_v31, %v220_v30 }
  0xb3   : > { %242 = vst [vmem:[%s137_s8 + $0x8] sm:$0xff] %v240_v32 }
  0xb4   : > { %415 = shalt.err (!%p412_p3)
}
  0xb5   : > { %s452_s27 = smov 128   ;;  %s453_s28 = smov 8  }
  0xb6   : > { %347 = dma.vmem_to_hbm [thread:$0]  (%p507_p5), %s257_s14, 256, %s259_s16, %s244_s13, %s452_s27, %s452_s27, %s453_s28  }
  0xb7 PF: > { %p353_p4 = scmp.ge.s32.totalorder %s450_s12, 2  ;;  %s273_s29 = sand.u32 1, %s438_s9  }
  0xb8   : > { %s274_s30 = scalar_lea.sflag [#allocation3], %s273_s29 }
  0xb9   : > { %p350_p7 = pnand %p353_p4, %p511_p6 }
  0xbb   : > { %p351_p8 = pneg %p350_p7 }
  0xbd   : > { %433 = dma.done.wait (%p351_p8), %s274_s30, 256  }
  0xbe   : > { %435 = vsyncadd (%p351_p8), %s274_s30, 4294967040  ;;  %p12_p9 = scmp.ge.s32.totalorder %s494_s15, 6   ;;  %s567_s9 = smov %s442_s10 }
  0xbf   : > { %s568_s10 = smov %s446_s11  ;;  %s569_s11 = smov %s505_s18 }
  0xc0   : > { %s570_s12 = smov %s494_s15  ;;  %14 = sbr.rel (!%p12_p9) target bundleno = 3 (0x3), region = 63 }
  0xc5   :  { %280 = vsyncpa [#allocation3], 1 }
  0xc6   :  { %282 = vsyncpa [#allocation3 + $0x1], 1 }

</bundles_post_ra>
